<compile_context>
chip_gen: v6e
topology: v6e:2x2x1
jax: 0.10.0
libtpu: 0.0.40
codegen_flags: <defaults>
</compile_context>

<pallas_src>
import jax
import jax.numpy as jnp
from jax.experimental import pallas as pl
from jax.experimental.pallas import tpu as pltpu


def mlp_kernel(x_ref, w1_ref, b1_ref, w2_ref, b2_ref, o_ref):
    # Transposed layout: batch on lanes, hidden on sublanes.
    x_row = x_ref[...]          # (1, TN)    input values, lane-dense
    w1c = w1_ref[...]           # (Hp, 1)    first-layer weights (column)
    b1c = b1_ref[...]           # (Hp, 1)    first-layer bias (column)
    w2c = w2_ref[...]           # (Hp, 1)    second-layer weights (column)
    b2 = b2_ref[0, 0]           # scalar from SMEM

    # hidden = relu(W1 * x + b1)  -> (Hp, TN)   pure VPU broadcast math
    h = jnp.maximum(w1c * x_row + b1c, 0.0)

    # out = sum_H(W2 * hidden) + b2 -> (1, TN)  XLU cross-sublane reduce
    y = jnp.sum(h * w2c, axis=0, keepdims=True) + b2

    o_ref[...] = y.astype(o_ref.dtype)   # lane-dense store


def net_forward(x, w1, b1, w2, b2):
    """Forward pass of Net: relu(x @ W1 + b1) @ W2 + b2.

    x  : (N, 1) float32
    w1 : (1, H),  b1 : (1, H)
    w2 : (H, 1),  b2 : (1, 1)
    Returns (N, 1) float32.
    """
    n, in_feature = x.shape
    h_dim = w1.shape[1]
    out_feature = w2.shape[1]
    assert in_feature == 1 and out_feature == 1, "kernel specialized to Net(1, H, 1)"

    # --- batch padding: lane axis, multiple of 128, blocked for large N ---
    def round_up(a, m):
        return ((a + m - 1) // m) * m

    block_n = min(512, round_up(n, 128))     # lane-block per grid step
    n_pad = round_up(n, block_n)
    grid_n = n_pad // block_n

    x_row = jnp.zeros((1, n_pad), jnp.float32).at[0, :n].set(
        x[:, 0].astype(jnp.float32))

    # --- hidden padding: sublane axis, multiple of 8, zero-padded weights ---
    h_pad = round_up(h_dim, 8)
    w1_col = jnp.zeros((h_pad, 1), jnp.float32).at[:h_dim, :].set(
        w1.T.astype(jnp.float32))
    b1_col = jnp.zeros((h_pad, 1), jnp.float32).at[:h_dim, :].set(
        b1.T.astype(jnp.float32))
    w2_col = jnp.zeros((h_pad, 1), jnp.float32).at[:h_dim, :].set(
        w2.astype(jnp.float32))
    b2_sc = b2.reshape(1, 1).astype(jnp.float32)     # (1, 1) -> SMEM scalar

    y_row = pl.pallas_call(
        mlp_kernel,
        out_shape=jax.ShapeDtypeStruct((1, n_pad), jnp.float32),
        grid=(grid_n,),
        in_specs=[
            pl.BlockSpec((1, block_n), lambda i: (0, i)),                 # x block
            pl.BlockSpec((h_pad, 1), lambda i: (0, 0)),                   # w1 (whole)
            pl.BlockSpec((h_pad, 1), lambda i: (0, 0)),                   # b1 (whole)
            pl.BlockSpec((h_pad, 1), lambda i: (0, 0)),                   # w2 (whole)
            pl.BlockSpec(memory_space=pltpu.MemorySpace.SMEM),            # b2 scalar
        ],
        out_specs=pl.BlockSpec((1, block_n), lambda i: (0, i)),
        compiler_params=pltpu.CompilerParams(
            dimension_semantics=("parallel",)),
    )(x_row, w1_col, b1_col, w2_col, b2_sc)

    # Back to the torch layout (N, 1), dropping lane padding.
    return y_row[0, :n][:, None]


if __name__ == "__main__":
    # Net(1, 32, 1) applied to x = linspace(-1, 1, 100)[:, None] (as in the spec).
    in_feature, n_hidden, out_feature = 1, 32, 1
    n = 100

    key = jax.random.PRNGKey(0)
    k1, k2, k3, k4 = jax.random.split(key, 4)

    bound1 = 1.0 / (in_feature ** 0.5)
    w1 = jax.random.uniform(k1, (in_feature, n_hidden), jnp.float32, -bound1, bound1)
    b1 = jax.random.uniform(k2, (1, n_hidden), jnp.float32, -bound1, bound1)

    bound2 = 1.0 / (n_hidden ** 0.5)
    w2 = jax.random.uniform(k3, (n_hidden, out_feature), jnp.float32, -bound2, bound2)
    b2 = jax.random.uniform(k4, (1, out_feature), jnp.float32, -bound2, bound2)

    x = jnp.linspace(-1.0, 1.0, n, dtype=jnp.float32)[:, None]

    y = net_forward(x, w1, b1, w2, b2)
    jax.block_until_ready(y)

    # Cross-check against pure-JAX reference.
    y_ref = jnp.maximum(x @ w1 + b1, 0.0) @ w2 + b2
    assert y.shape == (n, out_feature)
    assert jnp.allclose(y, y_ref, atol=1e-5), "mismatch vs reference"

    print("KERNEL_OK")
</pallas_src>

<mosaic_0001>
module attributes {stable_mosaic.version = 11 : i64} {
  func.func @mlp_kernel(%arg0: i32, %arg1: memref<1x128xf32, #tpu.memory_space<vmem>>, %arg2: memref<32x1xf32, #tpu.memory_space<vmem>>, %arg3: memref<32x1xf32, #tpu.memory_space<vmem>>, %arg4: memref<32x1xf32, #tpu.memory_space<vmem>>, %arg5: memref<1x1xf32, #tpu.memory_space<smem>>, %arg6: memref<1x128xf32, #tpu.memory_space<vmem>>) attributes {dimension_semantics = [#tpu.dimension_semantics<parallel>], iteration_bounds = array<i64: 1>, scalar_prefetch = 0 : i64, scratch_operands = 0 : i64, tpu.core_type = #tpu.core_type<tc>, window_params = [{transform_indices = @transform_0, window_bounds = array<i64: 1, 128>}, {pipeline_mode = #tpu.pipeline_mode<synchronous>, transform_indices = @transform_1, window_bounds = array<i64: 32, 1>}, {pipeline_mode = #tpu.pipeline_mode<synchronous>, transform_indices = @transform_2, window_bounds = array<i64: 32, 1>}, {pipeline_mode = #tpu.pipeline_mode<synchronous>, transform_indices = @transform_3, window_bounds = array<i64: 32, 1>}, {transform_indices = @transform_4, window_bounds = array<i64: 1, 1>}, {transform_indices = @transform_5, window_bounds = array<i64: 1, 128>}]} {
    %c0 = arith.constant 0 : index
    %c0_0 = arith.constant 0 : index
    %0 = vector.load %arg1[%c0, %c0_0] : memref<1x128xf32, #tpu.memory_space<vmem>>, vector<1x128xf32>
    %c0_1 = arith.constant 0 : index
    %c0_2 = arith.constant 0 : index
    %1 = vector.load %arg2[%c0_1, %c0_2] : memref<32x1xf32, #tpu.memory_space<vmem>>, vector<32x1xf32>
    %c0_3 = arith.constant 0 : index
    %c0_4 = arith.constant 0 : index
    %2 = vector.load %arg3[%c0_3, %c0_4] : memref<32x1xf32, #tpu.memory_space<vmem>>, vector<32x1xf32>
    %c0_5 = arith.constant 0 : index
    %c0_6 = arith.constant 0 : index
    %3 = vector.load %arg4[%c0_5, %c0_6] : memref<32x1xf32, #tpu.memory_space<vmem>>, vector<32x1xf32>
    %c0_7 = arith.constant 0 : index
    %c0_8 = arith.constant 0 : index
    %4 = memref.load %arg5[%c0_7, %c0_8] : memref<1x1xf32, #tpu.memory_space<smem>>
    %5 = vector.broadcast %1 : vector<32x1xf32> to vector<32x128xf32>
    %6 = vector.broadcast %0 : vector<1x128xf32> to vector<32x128xf32>
    %7 = arith.mulf %5, %6 : vector<32x128xf32>
    %8 = vector.broadcast %2 : vector<32x1xf32> to vector<32x128xf32>
    %9 = arith.addf %7, %8 : vector<32x128xf32>
    %cst = arith.constant 0.000000e+00 : f32
    %10 = vector.broadcast %cst : f32 to vector<32x128xf32>
    %11 = arith.maximumf %9, %10 : vector<32x128xf32>
    %12 = vector.broadcast %3 : vector<32x1xf32> to vector<32x128xf32>
    %13 = arith.mulf %11, %12 : vector<32x128xf32>
    %cst_9 = arith.constant dense<0.000000e+00> : vector<128xf32>
    %14 = vector.multi_reduction <add>, %13, %cst_9 [0] : vector<32x128xf32> to vector<128xf32>
    %15 = vector.shape_cast %14 : vector<128xf32> to vector<1x128xf32>
    %16 = vector.broadcast %4 : f32 to vector<1x128xf32>
    %17 = arith.addf %15, %16 : vector<1x128xf32>
    %c0_10 = arith.constant 0 : index
    %c0_11 = arith.constant 0 : index
    %18 = vector.load %arg6[%c0_10, %c0_11] : memref<1x128xf32, #tpu.memory_space<vmem>>, vector<1x128xf32>
    tpu.vector_store %arg6[%c0_10, %c0_11], %17 {strides = array<i32>} : memref<1x128xf32, #tpu.memory_space<vmem>>, vector<1x128xf32>,
    return
  }
  func.func @transform_0(%arg0: i32) -> (i32, i32) {
    %c0_i32 = arith.constant 0 : i32
    %c0_i32_0 = arith.constant 0 : i32
    return %c0_i32, %arg0 : i32, i32
  }
  func.func @transform_1(%arg0: i32) -> (i32, i32) {
    %c0_i32 = arith.constant 0 : i32
    %c0_i32_0 = arith.constant 0 : i32
    %c0_i32_1 = arith.constant 0 : i32
    return %c0_i32, %c0_i32_0 : i32, i32
  }
  func.func @transform_2(%arg0: i32) -> (i32, i32) {
    %c0_i32 = arith.constant 0 : i32
    %c0_i32_0 = arith.constant 0 : i32
    %c0_i32_1 = arith.constant 0 : i32
    return %c0_i32, %c0_i32_0 : i32, i32
  }
  func.func @transform_3(%arg0: i32) -> (i32, i32) {
    %c0_i32 = arith.constant 0 : i32
    %c0_i32_0 = arith.constant 0 : i32
    %c0_i32_1 = arith.constant 0 : i32
    return %c0_i32, %c0_i32_0 : i32, i32
  }
  func.func @transform_4(%arg0: i32) -> (i32, i32) {
    %c0_i32 = arith.constant 0 : i32
    %c0_i32_0 = arith.constant 0 : i32
    %c0_i32_1 = arith.constant 0 : i32
    return %c0_i32, %c0_i32_0 : i32, i32
  }
  func.func @transform_5(%arg0: i32) -> (i32, i32) {
    %c0_i32 = arith.constant 0 : i32
    %c0_i32_0 = arith.constant 0 : i32
    return %c0_i32, %arg0 : i32, i32
  }
}

</mosaic_0001>

<bundles_post_ra>
// kernel: tpu_custom_call.1
= control target key start
LH: loop header
LB: loop body
LE: loop exit
PB: predicated region body
PF: predicated region fallthrough
CT: control target
= control target key end

     0   :  { %v171_v2 = vmov 0   ;;  %s248_s0 = inlined_call_operand.vmem [shape: f32[1,128], index: 0, kind: input, shape index: {}]   ;;  %s249_s1 = inlined_call_operand.vmem [shape: f32[32,1], index: 1, kind: input, shape index: {}]   ;;  %s250_s2 = inlined_call_operand.vmem [shape: f32[32,1], index: 2, kind: input, shape index: {}]   ;;  %s251_s3 = inlined_call_operand.vmem [shape: f32[32,1], index: 3, kind: input, shape index: {}]   ;;  %s252_s4 = inlined_call_operand.<no memory space> [shape: f32[1,1], index: 4, kind: input, shape index: {}]   ;;  %s253_s5 = inlined_call_operand.hbm [shape: f32[1,128], index: 5, kind: output, shape index: {}]  }
   0x1   :  { %v25_v0 = vld [vmem:[%s249_s1 + $0x10] sm:$0xff]  ;;  %v23_v1 = vld [vmem:[%s249_s1] sm:$0xff]  ;;  %148 = vset.pattern.permute.xlu1 %v171_v2  ;;  %147 = vset.pattern.permute.xlu0 %v171_v2  ;;  %v24_v4 = vld [vmem:[%s249_s1 + $0x8] sm:$0xff] }
   0x2   :  { %48 = vperm.xlu1 %148, %v25_v0   ;;  %38 = vperm.xlu0 %147, %v23_v1   ;;  %v27_v3 = vld [vmem:[%s250_s2] sm:$0xff] }
   0x3   :  { %11 = vsyncpa [#allocation4], 0  ;;  %v26_v5 = vld [vmem:[%s249_s1 + $0x18] sm:$0xff]  ;;  %v28_v6 = vld [vmem:[%s250_s2 + $0x8] sm:$0xff]  ;;  %v127_v50 = vstv %s252_s4  ;;  %s172_s17 = smov [#allocation3]  }
   0x4   :  { %v30_v7 = vld [vmem:[%s250_s2 + $0x18] sm:$0xff]  ;;  %v29_v8 = vld [vmem:[%s250_s2 + $0x10] sm:$0xff]  ;;  %v32_v9 = vld [vmem:[%s251_s3 + $0x8] sm:$0xff]  ;;  %s136_s18 = sshll.u32 %s172_s17, 4  ;;  %s137_s18 = int_to_ptr.vmem [resolvable:$true] %s136_s18 }
   0x5   :  { %v31_v10 = vld [vmem:[%s251_s3] sm:$0xff]  ;;  %v34_v11 = vld [vmem:[%s251_s3 + $0x18] sm:$0xff]  ;;  %v33_v12 = vld [vmem:[%s251_s3 + $0x10] sm:$0xff]  ;;  %s149_s19 = scalar_lea.vmem %s137_s18, 16  ;;  %s153_s20 = scalar_lea.vmem %s137_s18, 32 }
   0x6   :  { %68 = vperm.xlu1 %148, %v27_v3   ;;  %43 = vperm.xlu0 %147, %v24_v4   ;;  %v144_v17 = vld [vmem:[%s248_s0] ss:$0 sm:$0xff]  ;;  %p150_p0 = scmp.ne.s32.totalorder %s137_s18, %s149_s19  ;;  %p154_p1 = scmp.lt.s32.totalorder %s137_s18, %s137_s18 }
   0x7   :  { %p155_p2 = scmp.lt.s32.totalorder %s153_s20, %s149_s19 }
   0x9   :  { %p156_p3 = por %p155_p2, %p154_p1 }
   0xa   :  { %53 = vperm.xlu1 %148, %v26_v5   ;;  %73 = vperm.xlu0 %147, %v28_v6  }
   0xb   :  { %p157_p4 = pnand %p156_p3, %p150_p0 }
   0xe   :  { %83 = vperm.xlu1 %148, %v30_v7   ;;  %78 = vperm.xlu0 %147, %v29_v8  }
  0x12   :  { %101 = vperm.xlu1 %148, %v32_v9   ;;  %96 = vperm.xlu0 %147, %v31_v10  }
  0x16   :  { %111 = vperm.xlu1 %148, %v34_v11   ;;  %106 = vperm.xlu0 %147, %v33_v12  }
  0x7d   :  { %v49_v13 = vpop.permute.xlu1 %48  ;;  %v39_v14 = vpop.permute.xlu0 %38 }
  0x7e   :  { %v62_v20 = vmul.f32 %v144_v17, %v39_v14  ;;  %v64_v26 = vmul.f32 %v144_v17, %v49_v13 }
  0x81   :  { %v69_v15 = vpop.permute.xlu1 %68  ;;  %v44_v16 = vpop.permute.xlu0 %43 }
  0x82   :  { %v63_v21 = vmul.f32 %v144_v17, %v44_v16  ;;  %v86_v22 = vadd.f32 %v69_v15, %v62_v20 }
  0x84   :  { %v90_v27 = vmax.f32 %v86_v22, 0.0 }
  0x85   :  { %v54_v18 = vpop.permute.xlu1 %53  ;;  %v74_v19 = vpop.permute.xlu0 %73 }
  0x86   :  { %v87_v23 = vadd.f32 %v74_v19, %v63_v21  ;;  %v65_v28 = vmul.f32 %v144_v17, %v54_v18 }
  0x88   :  { %v91_v29 = vmax.f32 %v87_v23, 0.0 }
  0x89   :  { %v84_v24 = vpop.permute.xlu1 %83  ;;  %v79_v25 = vpop.permute.xlu0 %78 }
  0x8a   :  { %v88_v30 = vadd.f32 %v79_v25, %v64_v26  ;;  %v89_v33 = vadd.f32 %v84_v24, %v65_v28 }
  0x8c   :  { %v92_v36 = vmax.f32 %v88_v30, 0.0  ;;  %v93_v39 = vmax.f32 %v89_v33, 0.0 }
  0x8d   :  { %v102_v31 = vpop.permute.xlu1 %101  ;;  %v97_v32 = vpop.permute.xlu0 %96 }
  0x8e   :  { %v115_v34 = vmul.f32 %v102_v31, %v91_v29  ;;  %v114_v35 = vmul.f32 %v97_v32, %v90_v27 }
  0x90   :  { %v118_v40 = vadd.f32 %v115_v34, %v114_v35 }
  0x91   :  { %v112_v37 = vpop.permute.xlu1 %111  ;;  %v107_v38 = vpop.permute.xlu0 %106 }
  0x92   :  { %v116_v41 = vmul.f32 %v107_v38, %v92_v36  ;;  %v117_v42 = vmul.f32 %v112_v37, %v93_v39 }
  0x94   :  { %v119_v43 = vadd.f32 %v118_v40, %v116_v41 }
  0x96   :  { %v120_v44 = vadd.f32 %v119_v43, %v117_v42 }
  0x98   :  { %v121_v45 = vrot.slane %v120_v44, 4 }
  0x9a   :  { %v122_v46 = vadd.f32 %v121_v45, %v120_v44 }
  0x9c   :  { %v123_v47 = vrot.slane %v122_v46, 2 }
  0x9e   :  { %v124_v48 = vadd.f32 %v123_v47, %v122_v46 }
  0xa0   :  { %v125_v49 = vrot.slane %v124_v48, 1 }
  0xa2   :  { %v126_v51 = vadd.f32 %v125_v49, %v124_v48 }
  0xa4   :  { %v128_v52 = vadd.f32 %v127_v50, %v126_v51 }
  0xa6   :  { %129 = vst [vmem:[#allocation3] sm:$0x1] %v128_v52 }
  0xa7   :  { %160 = shalt.err (!%p157_p4)
}
  0xa8   :  { %139 = dma.vmem_to_hbm [thread:$0]  %s137_s18, 16, %s253_s5, [#allocation4]  }
  0xa9   :  { %169 = dma.done.wait [#allocation4], 16  }
  0xaa   :  { %170 = vsyncadd [#allocation4], 4294967280 }
  0xab   :  { %143 = vsyncpa [#allocation4], 1 }

</bundles_post_ra>
